<compile_context>
chip_gen: v6e
topology: v6e:2x2x1
jax: 0.10.0
libtpu: 0.0.40
codegen_flags: <defaults>
</compile_context>

<pallas_src>
import jax
import jax.numpy as jnp
from jax.experimental import pallas as pl
from jax.experimental.pallas import tpu as pltpu


# Tile-size targets (clamped / adapted to the problem size).
TM, TK, TN = 512, 512, 1024
MIN_TK = 256          # keep K tiles long enough to hide the f32 acc RMW (v5e)
MIN_TN = 256
VMEM_LIMIT_BYTES = 48 * 1024 * 1024   # < v7x 64 MiB/TC physical, > 32 MiB default


def _round_up(x, m):
    return (x + m - 1) // m * m


def _tile_and_pad(dim, target, align, min_tile):
    """Return (tile, padded_dim) with tile % align == 0 and padded_dim % tile == 0.

    Prefers a tile (>= min_tile) that divides round_up(dim, align), i.e. no
    extra padding beyond lane/sublane alignment; otherwise falls back to
    tile=target and pads dim up to a multiple of target."""
    padded = _round_up(dim, align)
    if padded <= target:
        return padded, padded
    t = (target // align) * align
    while t >= min_tile:
        if padded % t == 0:
            return t, padded
        t -= align
    return target, _round_up(dim, target)


def linear_relu_kernel(x_ref, w_ref, b_ref, o_ref, acc_ref):
    k = pl.program_id(2)

    @pl.when(k == 0)
    def _init():
        # Bias folded into the accumulator init (replaces the zero-init, removes
        # a full (tm, tn) f32 add from the last-k critical path).
        acc_ref[...] = jnp.broadcast_to(b_ref[...], acc_ref.shape)

    # Pure MXU accumulate in the reduction (K) loop.
    acc_ref[...] += jnp.dot(x_ref[...], w_ref[...],
                            preferred_element_type=jnp.float32)

    # Fused epilogue on the last K step: ReLU + cast + lane-dense store.
    @pl.when(k == pl.num_programs(2) - 1)
    def _epilogue():
        o_ref[...] = jnp.maximum(acc_ref[...], 0.0).astype(o_ref.dtype)


def prepare_params(weight, bias, compute_dtype=jnp.bfloat16):
    """One-time parameter prep (call at init, NOT per forward).

    weight [out_f, in_f] -> transposed to [in_f, out_f], zero-padded to the
    kernel's (K, N) tiling, cast to the MXU compute dtype.
    bias [out_f] -> [1, n_pad] float32 (accumulator init stays in f32)."""
    out_f, in_f = weight.shape
    _, k_pad = _tile_and_pad(in_f, TK, 128, MIN_TK)
    _, n_pad = _tile_and_pad(out_f, TN, 128, MIN_TN)
    w_t = jnp.pad(weight.T, ((0, k_pad - in_f), (0, n_pad - out_f)))
    b = jnp.pad(bias, (0, n_pad - out_f)).reshape(1, n_pad).astype(jnp.float32)
    return w_t.astype(compute_dtype), b


def linear_relu(x, w_prep, b_prep, out_features, *, slice_output=True):
    """x: [B, in_f]; w_prep/b_prep from prepare_params().

    Returns [B, out_features] (or [B, n_pad] if slice_output=False, for fused
    consumers that accept the lane-padded width)."""
    M, K = x.shape
    out_dtype = x.dtype
    compute_dtype = w_prep.dtype
    k_pad_w, n_pad_w = w_prep.shape

    tk, k_pad = _tile_and_pad(K, TK, 128, MIN_TK)
    tn, n_pad = _tile_and_pad(out_features, TN, 128, MIN_TN)
    assert (k_pad, n_pad) == (k_pad_w, n_pad_w), \
        "params were prepared for a different shape / tile config"

    # M: no host padding. pl.cdiv grid + (M, n_pad) out_shape; edge blocks are
    # handled by Pallas. tm aligned to the native bf16 (16,128) packed tile.
    m_align = 16 if jnp.dtype(compute_dtype).itemsize <= 2 else 8
    tm = min(TM, _round_up(M, m_align))

    # v7x megacore: the 2 TensorCores shard the "parallel" grid axes — make sure
    # there are >= 2 parallel blocks when the problem allows it. Prefer splitting
    # N (only duplicates the cheap x reads) over splitting M (duplicates W reads).
    if pl.cdiv(M, tm) * (n_pad // tn) < 2:
        if tn >= 512 and tn % 256 == 0:
            tn //= 2
        elif tm >= 2 * m_align and M > m_align:
            tm = _round_up((tm + 1) // 2, m_align)

    grid = (pl.cdiv(M, tm), n_pad // tn, k_pad // tk)

    # Only remaining host-side pass over x: K pad when no tk in [MIN_TK, TK]
    # divides round_up(K, 128). Required for correctness: un-DMA'd K-edge
    # columns could hold NaNs and poison the accumulator even against W's
    # zero-padded rows.
    if k_pad != K:
        x = jnp.pad(x, ((0, 0), (0, k_pad - K)))
    # Cast only if the caller did not already provide activations in the compute
    # dtype (keep activations bf16 end-to-end to make this a no-op).
    if x.dtype != compute_dtype:
        x = x.astype(compute_dtype)

    # Small-batch = pure weight stream: deepen the W pipeline to hide DMA
    # issue/turnaround bubbles between K steps.
    w_buffers = 3 if (M <= 256 and grid[2] >= 3) else 2

    itemsize = jnp.dtype(compute_dtype).itemsize
    cost = pl.CostEstimate(
        flops=2 * M * k_pad * n_pad,
        transcendentals=0,
        bytes_accessed=(M * k_pad * itemsize                      # x
                        + k_pad * n_pad * itemsize                # W
                        + n_pad * 4                               # bias
                        + M * n_pad * jnp.dtype(out_dtype).itemsize))  # out

    out = pl.pallas_call(
        linear_relu_kernel,
        out_shape=jax.ShapeDtypeStruct((M, n_pad), out_dtype),
        grid_spec=pltpu.PrefetchScalarGridSpec(
            num_scalar_prefetch=0,
            grid=grid,
            in_specs=[
                pl.BlockSpec((tm, tk), lambda i, j, k: (i, k)),           # x tile
                pl.BlockSpec((tk, tn), lambda i, j, k: (k, j),            # W tile
                             pipeline_mode=pl.Buffered(w_buffers)),
                pl.BlockSpec((1, tn), lambda i, j, k: (0, j)),            # bias
            ],
            out_specs=pl.BlockSpec((tm, tn), lambda i, j, k: (i, j)),
            scratch_shapes=[pltpu.VMEM((tm, tn), jnp.float32)],           # f32 acc
        ),
        compiler_params=pltpu.CompilerParams(
            dimension_semantics=("parallel", "parallel", "arbitrary"),
            vmem_limit_bytes=VMEM_LIMIT_BYTES),
        cost_estimate=cost,
    )(x, w_prep, b_prep)

    if slice_output and n_pad != out_features:
        out = out[:, :out_features]
    return out


def init_params(key, in_features, out_features):
    # Deterministic init mimicking PyTorch's kaiming-uniform default bounds.
    k_w, k_b = jax.random.split(key)
    bound = 1.0 / jnp.sqrt(in_features)
    weight = jax.random.uniform(
        k_w, (out_features, in_features), jnp.float32, -bound, bound)
    bias = jax.random.uniform(
        k_b, (out_features,), jnp.float32, -bound, bound)
    return weight, bias


if __name__ == "__main__":
    key = jax.random.PRNGKey(0)
    k_x, k_p, k_x2, k_p2 = jax.random.split(key, 4)

    # Small shapes consistent with the module.
    batch, in_features, out_features = 8, 32, 16
    x = jax.random.normal(k_x, (batch, in_features), jnp.float32)
    weight, bias = init_params(k_p, in_features, out_features)
    ref = jnp.maximum(x @ weight.T + bias, 0.0)

    # f32 compute path: validates grid / accumulator / bias-fold / epilogue exactly.
    w32, b32 = prepare_params(weight, bias, compute_dtype=jnp.float32)
    out_f32 = linear_relu(x, w32, b32, out_features)

    # bf16 production path: activations kept in bf16 end-to-end (no per-call cast).
    wbf, bbf = prepare_params(weight, bias, compute_dtype=jnp.bfloat16)
    out_bf16 = linear_relu(x.astype(jnp.bfloat16), wbf, bbf, out_features)

    jax.block_until_ready((out_f32, out_bf16))
    assert out_f32.shape == (batch, out_features)
    assert jnp.allclose(out_f32, ref, atol=1e-5, rtol=1e-5)
    assert jnp.allclose(out_bf16.astype(jnp.float32), ref, atol=3e-2, rtol=3e-2)

    # Second check: multi-step K accumulation (tk=384 divides 1152 -> no x pad),
    # 640-wide N tile with no N padding, deepened W buffering at small batch.
    b2, in2, out2 = 16, 1152, 640
    x2 = jax.random.normal(k_x2, (b2, in2), jnp.float32)
    w2, bias2 = init_params(k_p2, in2, out2)
    w2p, b2p = prepare_params(w2, bias2, compute_dtype=jnp.bfloat16)
    out2_k = linear_relu(x2.astype(jnp.bfloat16), w2p, b2p, out2)
    jax.block_until_ready(out2_k)
    ref2 = jnp.maximum(x2 @ w2.T + bias2, 0.0)
    assert out2_k.shape == (b2, out2)
    assert jnp.allclose(out2_k.astype(jnp.float32), ref2, atol=3e-2, rtol=3e-2)

    print("KERNEL_OK")
</pallas_src>

<mosaic_0001>
module attributes {stable_mosaic.version = 11 : i64} {
  func.func @linear_relu_kernel(%arg0: i32, %arg1: i32, %arg2: i32, %arg3: memref<8x128xf32, #tpu.memory_space<vmem>>, %arg4: memref<128x128xf32, #tpu.memory_space<vmem>>, %arg5: memref<1x128xf32, #tpu.memory_space<vmem>>, %arg6: memref<8x128xf32, #tpu.memory_space<vmem>>, %arg7: memref<8x128xf32, #tpu.memory_space<vmem>>) attributes {dimension_semantics = [#tpu.dimension_semantics<parallel>, #tpu.dimension_semantics<parallel>, #tpu.dimension_semantics<arbitrary>], iteration_bounds = array<i64: 1, 1, 1>, scalar_prefetch = 0 : i64, scratch_operands = 1 : i64, tpu.core_type = #tpu.core_type<tc>, window_params = [{transform_indices = @transform_0, window_bounds = array<i64: 8, 128>}, {pipeline_mode = #tpu.pipeline_mode<double_buffered>, transform_indices = @transform_1, window_bounds = array<i64: 128, 128>}, {transform_indices = @transform_2, window_bounds = array<i64: 1, 128>}, {transform_indices = @transform_3, window_bounds = array<i64: 8, 128>}]} {
    %c0_i32 = arith.constant 0 : i32
    %0 = arith.cmpi eq, %arg2, %c0_i32 : i32
    %1 = arith.extui %0 : i1 to i32
    %c0_i32_0 = arith.constant 0 : i32
    %2 = arith.cmpi ne, %1, %c0_i32_0 : i32
    scf.if %2 {
      %c0_10 = arith.constant 0 : index
      %c0_11 = arith.constant 0 : index
      %12 = vector.load %arg5[%c0_10, %c0_11] : memref<1x128xf32, #tpu.memory_space<vmem>>, vector<1x128xf32>
      %13 = vector.shape_cast %12 : vector<1x128xf32> to vector<1x128xf32>
      %14 = vector.broadcast %13 : vector<1x128xf32> to vector<8x128xf32>
      %c0_12 = arith.constant 0 : index
      %c0_13 = arith.constant 0 : index
      %15 = vector.load %arg7[%c0_12, %c0_13] : memref<8x128xf32, #tpu.memory_space<vmem>>, vector<8x128xf32>
      tpu.vector_store %arg7[%c0_12, %c0_13], %14 {strides = array<i32>} : memref<8x128xf32, #tpu.memory_space<vmem>>, vector<8x128xf32>,
    } else {
    }
    %c0 = arith.constant 0 : index
    %c0_1 = arith.constant 0 : index
    %3 = vector.load %arg7[%c0, %c0_1] : memref<8x128xf32, #tpu.memory_space<vmem>>, vector<8x128xf32>
    %c0_2 = arith.constant 0 : index
    %c0_3 = arith.constant 0 : index
    %4 = vector.load %arg3[%c0_2, %c0_3] : memref<8x128xf32, #tpu.memory_space<vmem>>, vector<8x128xf32>
    %c0_4 = arith.constant 0 : index
    %c0_5 = arith.constant 0 : index
    %5 = vector.load %arg4[%c0_4, %c0_5] : memref<128x128xf32, #tpu.memory_space<vmem>>, vector<128x128xf32>
    %cst = arith.constant dense<0.000000e+00> : vector<8x128xf32>
    %6 = tpu.matmul %4, %5, %cst {dimension_numbers = #tpu.dot_dimension_numbers<[1], [0], [0], [1], [0, 0, 1, 1], [], []>} : vector<8x128xf32>, vector<128x128xf32>, vector<8x128xf32> -> vector<8x128xf32>
    %7 = arith.addf %3, %6 : vector<8x128xf32>
    %c0_6 = arith.constant 0 : index
    %c0_7 = arith.constant 0 : index
    %8 = vector.load %arg7[%c0_6, %c0_7] : memref<8x128xf32, #tpu.memory_space<vmem>>, vector<8x128xf32>
    tpu.vector_store %arg7[%c0_6, %c0_7], %7 {strides = array<i32>} : memref<8x128xf32, #tpu.memory_space<vmem>>, vector<8x128xf32>,
    %c0_i32_8 = arith.constant 0 : i32
    %9 = arith.cmpi eq, %arg2, %c0_i32_8 : i32
    %10 = arith.extui %9 : i1 to i32
    %c0_i32_9 = arith.constant 0 : i32
    %11 = arith.cmpi ne, %10, %c0_i32_9 : i32
    scf.if %11 {
      %c0_10 = arith.constant 0 : index
      %c0_11 = arith.constant 0 : index
      %12 = vector.load %arg7[%c0_10, %c0_11] : memref<8x128xf32, #tpu.memory_space<vmem>>, vector<8x128xf32>
      %cst_12 = arith.constant 0.000000e+00 : f32
      %13 = vector.broadcast %cst_12 : f32 to vector<8x128xf32>
      %14 = arith.maximumf %12, %13 : vector<8x128xf32>
      %c0_13 = arith.constant 0 : index
      %c0_14 = arith.constant 0 : index
      %15 = vector.load %arg6[%c0_13, %c0_14] : memref<8x128xf32, #tpu.memory_space<vmem>>, vector<8x128xf32>
      tpu.vector_store %arg6[%c0_13, %c0_14], %14 {strides = array<i32>} : memref<8x128xf32, #tpu.memory_space<vmem>>, vector<8x128xf32>,
    } else {
    }
    return
  }
  func.func @transform_0(%arg0: i32, %arg1: i32, %arg2: i32) -> (i32, i32) {
    %c0_i32 = arith.constant 0 : i32
    return %arg0, %arg2 : i32, i32
  }
  func.func @transform_1(%arg0: i32, %arg1: i32, %arg2: i32) -> (i32, i32) {
    %c0_i32 = arith.constant 0 : i32
    return %arg2, %arg1 : i32, i32
  }
  func.func @transform_2(%arg0: i32, %arg1: i32, %arg2: i32) -> (i32, i32) {
    %c0_i32 = arith.constant 0 : i32
    %c0_i32_0 = arith.constant 0 : i32
    return %c0_i32, %arg1 : i32, i32
  }
  func.func @transform_3(%arg0: i32, %arg1: i32, %arg2: i32) -> (i32, i32) {
    %c0_i32 = arith.constant 0 : i32
    return %arg0, %arg1 : i32, i32
  }
}

</mosaic_0001>

<bundles_post_ra>
// kernel: tpu_custom_call.1
= control target key start
LH: loop header
LB: loop body
LE: loop exit
PB: predicated region body
PF: predicated region fallthrough
CT: control target
= control target key end

     0   :  { %8 = vsyncpa [#allocation4], 0  ;;  %s330_s0 = inlined_call_operand.hbm [shape: f32[8,128], index: 0, kind: input, shape index: {}]   ;;  %s331_s1 = inlined_call_operand.hbm [shape: f32[128,128], index: 1, kind: input, shape index: {}]   ;;  %s332_s2 = inlined_call_operand.vmem [shape: f32[1,128], index: 2, kind: input, shape index: {}]   ;;  %s333_s3 = inlined_call_operand.hbm [shape: f32[8,128], index: 3, kind: output, shape index: {}]  }
   0x1   :  { %9 = vsyncpa [#allocation7], 0 }
   0x2   :  { %10 = vsyncpa [#allocation5], 0  ;;  %s291_s12 = smov [#allocation3]   ;;  %s292_s14 = smov [#allocation6]  }
   0x3   :  { %s17_s13 = sshll.u32 %s291_s12, 4  ;;  %s26_s15 = sshll.u32 %s292_s14, 4  ;;  %s18_s13 = int_to_ptr.vmem [resolvable:$true] %s17_s13  ;;  %s27_s15 = int_to_ptr.vmem [resolvable:$true] %s26_s15 }
   0x4   :  { %s233_s16 = scalar_lea.vmem %s18_s13, 128  ;;  %p238_p1 = scmp.lt.s32.totalorder %s18_s13, %s18_s13 }
   0x5   :  { %p234_p0 = scmp.ne.s32.totalorder %s18_s13, %s233_s16  ;;  %p239_p2 = scmp.lt.s32.totalorder %s233_s16, %s233_s16 }
   0x7   :  { %p240_p3 = por %p239_p2, %p238_p1 }
   0x9   :  { %p241_p4 = pnand %p240_p3, %p234_p0 }
   0xb   :  { %244 = shalt.err (!%p241_p4)
}
   0xc   :  { %20 = dma.hbm_to_vmem [thread:$0]  %s330_s0, 128, %s18_s13, [#allocation4]  }
   0xd   :  { %s253_s19 = scalar_lea.vmem %s27_s15, 2048  ;;  %p258_p6 = scmp.lt.s32.totalorder %s27_s15, %s27_s15 }
   0xe   :  { %p254_p5 = scmp.ne.s32.totalorder %s27_s15, %s253_s19  ;;  %p259_p7 = scmp.lt.s32.totalorder %s253_s19, %s253_s19 }
  0x10   :  { %p260_p8 = por %p259_p7, %p258_p6 }
  0x12   :  { %p261_p9 = pnand %p260_p8, %p254_p5 }
  0x14   :  { %264 = shalt.err (!%p261_p9)
}
  0x15   :  { %s293_s20 = smov 128   ;;  %s294_s21 = smov 8  }
  0x16   :  { %32 = dma.hbm_to_vmem [thread:$0]  %s331_s1, 2048, %s27_s15, [#allocation7], %s293_s20, %s293_s20, %s294_s21  }
  0x17   :  { %285 = dma.done.wait [#allocation4], 128  }
  0x18   :  { %286 = vsyncadd [#allocation4], 4294967168 }
  0x19   :  { %287 = dma.done.wait [#allocation7], 2048  }
  0x1a   :  { %288 = vsyncadd [#allocation7], 4294965248  ;;  %v295_v0 = vmov 0.0   ;;  %vm296_vm0 = vmmov 0   ;;  %v70_v1 = vld [vmem:[#allocation6 + $0x78] sm:$0xff]  ;;  %v69_v2 = vld [vmem:[#allocation6 + $0x70] sm:$0xff] }
  0x1b   :  { %183 = vmatprep.subr.mxu0 %v295_v0  ;;  %215 = vmatprep.mubr.msk.f32.mxu0 %vm296_vm0, %v295_v0  ;;  %v68_v3 = vld [vmem:[#allocation6 + $0x68] sm:$0xff]  ;;  %v67_v4 = vld [vmem:[#allocation6 + $0x60] sm:$0xff]  ;;  %v66_v5 = vld [vmem:[#allocation6 + $0x58] sm:$0xff]  ;;  %s297_s24 = smov [#allocation8]  }
  0x1c   :  { %184 = vmatpush3.msra.mxu0 %v70_v1  ;;  %v65_v6 = vld [vmem:[#allocation6 + $0x50] sm:$0xff]  ;;  %v64_v7 = vld [vmem:[#allocation6 + $0x48] sm:$0xff]  ;;  %v63_v8 = vld [vmem:[#allocation6 + $0x40] sm:$0xff]  ;;  %s155_s25 = sshll.u32 %s297_s24, 4  ;;  %s156_s25 = int_to_ptr.vmem [resolvable:$true] %s155_s25 }
  0x1d   :  { %185 = vmatprep.subr.mxu0 %v295_v0  ;;  %v62_v9 = vld [vmem:[#allocation6 + $0x38] sm:$0xff]  ;;  %v61_v10 = vld [vmem:[#allocation6 + $0x30] sm:$0xff]  ;;  %v60_v11 = vld [vmem:[#allocation6 + $0x28] sm:$0xff]  ;;  %s265_s26 = scalar_lea.vmem %s156_s25, 128  ;;  %p270_p11 = scmp.lt.s32.totalorder %s156_s25, %s156_s25 }
  0x1e   :  { %186 = vmatpush3.msra.mxu0 %v69_v2  ;;  %v59_v12 = vld [vmem:[#allocation6 + $0x20] sm:$0xff]  ;;  %v58_v13 = vld [vmem:[#allocation6 + $0x18] sm:$0xff]  ;;  %v57_v14 = vld [vmem:[#allocation6 + $0x10] sm:$0xff]  ;;  %p266_p10 = scmp.ne.s32.totalorder %s156_s25, %s265_s26  ;;  %p271_p12 = scmp.lt.s32.totalorder %s265_s26, %s265_s26 }
  0x1f   :  { %187 = vmatprep.subr.mxu0 %v295_v0  ;;  %v56_v15 = vld [vmem:[#allocation6 + $0x8] sm:$0xff]  ;;  %v55_v16 = vld [vmem:[#allocation6] sm:$0xff]  ;;  %v54_v17 = vld [vmem:[#allocation3] sm:$0xff] }
  0x20   :  { %188 = vmatpush3.msra.mxu0 %v68_v3  ;;  %v165_v18 = vld [vmem:[%s332_s2] ss:$0 sm:$0xff]  ;;  %p272_p13 = por %p271_p12, %p270_p11 }
  0x21   :  { %189 = vmatprep.subr.mxu0 %v295_v0 }
  0x22   :  { %190 = vmatpush3.msra.mxu0 %v67_v4  ;;  %p273_p0 = pnand %p272_p13, %p266_p10 }
  0x23   :  { %191 = vmatprep.subr.mxu0 %v295_v0 }
  0x24   :  { %192 = vmatpush3.msra.mxu0 %v66_v5 }
  0x25   :  { %193 = vmatprep.subr.mxu0 %v295_v0 }
  0x26   :  { %194 = vmatpush3.msra.mxu0 %v65_v6 }
  0x27   :  { %195 = vmatprep.subr.mxu0 %v295_v0 }
  0x28   :  { %196 = vmatpush3.msra.mxu0 %v64_v7 }
  0x29   :  { %197 = vmatprep.subr.mxu0 %v295_v0 }
  0x2a   :  { %198 = vmatpush3.msra.mxu0 %v63_v8 }
  0x2b   :  { %199 = vmatprep.subr.mxu0 %v295_v0 }
  0x2c   :  { %200 = vmatpush3.msra.mxu0 %v62_v9 }
  0x2d   :  { %201 = vmatprep.subr.mxu0 %v295_v0 }
  0x2e   :  { %202 = vmatpush3.msra.mxu0 %v61_v10 }
  0x2f   :  { %203 = vmatprep.subr.mxu0 %v295_v0 }
  0x30   :  { %204 = vmatpush3.msra.mxu0 %v60_v11 }
  0x31   :  { %205 = vmatprep.subr.mxu0 %v295_v0 }
  0x32   :  { %206 = vmatpush3.msra.mxu0 %v59_v12 }
  0x33   :  { %207 = vmatprep.subr.mxu0 %v295_v0 }
  0x34   :  { %208 = vmatpush3.msra.mxu0 %v58_v13 }
  0x35   :  { %209 = vmatprep.subr.mxu0 %v295_v0 }
  0x36   :  { %210 = vmatpush3.msra.mxu0 %v57_v14 }
  0x37   :  { %211 = vmatprep.subr.mxu0 %v295_v0 }
  0x38   :  { %212 = vmatpush3.msra.mxu0 %v56_v15 }
  0x39   :  { %213 = vmatprep.subr.mxu0 %v295_v0 }
  0x3a   :  { %214 = vmatpush3.msra.mxu0 %v55_v16 }
  0x3b   :  { %216 = vmatmul.mubr.f32.vlgmr.msra.gmra.mxu0 %v54_v17 }
  0xfb   :  { %v137_v19 = vpop.f32.mrf.mxu0 }
  0xfc   :  { %v141_v20 = vadd.f32 %v165_v18, %v137_v19 }
  0xfd   :  { %v217_v21 = vpop.f32.mrf.mxu0 }
  0xfe   :  { %v147_v22 = vmax.f32 %v141_v20, 0.0 }
 0x100   :  { %148 = vst [vmem:[#allocation8] sm:$0xff] %v147_v22 }
 0x101   :  { %276 = shalt.err (!%p273_p0)
}
 0x102   :  { %158 = dma.vmem_to_hbm [thread:$0]  %s156_s25, 128, %s333_s3, [#allocation5]  }
 0x103   :  { %289 = dma.done.wait [#allocation5], 128  }
 0x104   :  { %290 = vsyncadd [#allocation5], 4294967168 }
 0x105   :  { %162 = vsyncpa [#allocation4], 1 }
 0x106   :  { %163 = vsyncpa [#allocation7], 1 }
 0x107   :  { %164 = vsyncpa [#allocation5], 1 }

</bundles_post_ra>
